<compile_context>
chip_gen: v7x
topology: tpu7x:2x2x1
jax: 0.10.0
libtpu: 0.0.40
codegen_flags: <defaults>
</compile_context>

<pallas_src>
import functools

import jax
import jax.numpy as jnp
from jax.experimental import pallas as pl
from jax.experimental.pallas import tpu as pltpu

LANES = 128    # lane width
SUB = 8        # sublane width (f32 vreg rows)
TM_MAX = 2048  # rows per grid step: (2048, 128) f32 == 1 MiB per input buffer
NCORES = 2     # leading "parallel" grid axis (both TCs on v7x; a harmless
               # extra outer iteration on single-TC v5e/v6e)


def _dice_bce_partials_kernel(pred_ref, target_ref, acc_ref, *,
                              n_elems, tm, steps_per_core, needs_mask):
    c = pl.program_id(0)
    s = pl.program_id(1)

    @pl.when(s == 0)
    def _init():
        acc_ref[...] = jnp.zeros_like(acc_ref)

    x = pred_ref[...].astype(jnp.float32)
    t = target_ref[...].astype(jnp.float32)

    # NOTE: the PyTorch module intentionally feeds the *already sigmoided*
    # prediction into BCEWithLogitsLoss; we reproduce that quirk exactly.
    #   bce(z, y) = max(z,0) - z*y + log1p(exp(-|z|)),  z = sigmoid(x) in (0,1)
    #             = z*(1-y) + log1p(exp(-z))
    p = jax.nn.sigmoid(x)
    log_term = jnp.log1p(jnp.exp(-p))

    if needs_mask:
        # Tail-validity mask computed in-kernel (no third HBM stream).
        base = (c * steps_per_core + s) * (tm * LANES)
        flat = (base
                + jax.lax.broadcasted_iota(jnp.int32, (tm, LANES), 0) * LANES
                + jax.lax.broadcasted_iota(jnp.int32, (tm, LANES), 1))
        m = (flat < n_elems).astype(jnp.float32)
        p = p * m
        log_term = log_term * m
        t = t * m  # padded targets are already zero; cheap safety

    pt = p * t
    bce = (p - pt) + log_term

    def fold(v):
        # (tm, 128) -> (8, 128) lane/sublane partial sums: pure VPU adds,
        # no cross-lane traffic until the final JAX-side reduce.
        return v.reshape(tm // SUB, SUB, LANES).sum(axis=0)

    for i, v in enumerate((pt, p, t, bce)):
        acc_ref[pl.ds(i * SUB, SUB), :] += fold(v)


def dice_bce_loss(pred, target, smooth=1e-6):
    """Pallas-TPU DiceBCELoss.  pred/target: any matching shape (e.g. NCHW)."""
    assert pred.shape == target.shape
    n_elems = int(pred.size)

    pred_f = pred.reshape(-1)      # no dtype cast here: keep HBM stream narrow
    target_f = target.reshape(-1)

    # Tile sizing: rows per (core, step) block, multiple of 8, capped so a
    # f32 block is <= 1 MiB (fits every generation's scoped-VMEM budget).
    rows_needed = pl.cdiv(n_elems, LANES)
    tm = max(SUB, min(TM_MAX, pl.cdiv(rows_needed, SUB * NCORES) * SUB))
    super_chunk = NCORES * tm * LANES
    padded = pl.cdiv(n_elems, super_chunk) * super_chunk
    pad = padded - n_elems
    if pad:
        pred_f = jnp.pad(pred_f, (0, pad))
        target_f = jnp.pad(target_f, (0, pad))
    rows = padded // LANES
    steps_per_core = rows // (NCORES * tm)

    pred2 = pred_f.reshape(rows, LANES)
    target2 = target_f.reshape(rows, LANES)

    kernel = functools.partial(
        _dice_bce_partials_kernel,
        n_elems=n_elems, tm=tm, steps_per_core=steps_per_core,
        needs_mask=pad > 0)

    # Output: per-core stack of four (8,128) partial-sum slabs.
    partials = pl.pallas_call(
        kernel,
        out_shape=jax.ShapeDtypeStruct((NCORES * 4 * SUB, LANES), jnp.float32),
        grid_spec=pltpu.PrefetchScalarGridSpec(
            num_scalar_prefetch=0,
            grid=(NCORES, steps_per_core),
            in_specs=[
                pl.BlockSpec((tm, LANES),
                             lambda c, s: (c * steps_per_core + s, 0)),
                pl.BlockSpec((tm, LANES),
                             lambda c, s: (c * steps_per_core + s, 0)),
            ],
            out_specs=pl.BlockSpec((4 * SUB, LANES), lambda c, s: (c, 0)),
        ),
        compiler_params=pltpu.CompilerParams(
            dimension_semantics=("parallel", "arbitrary")),
    )(pred2, target2)

    # Final cross-lane reduce + scalar loss math on a tiny (32 KiB) array.
    sums = partials.reshape(NCORES, 4, SUB, LANES).sum(axis=(0, 2, 3))
    inter, sum_p, sum_t, sum_bce = sums[0], sums[1], sums[2], sums[3]
    dice_loss = 1.0 - (2.0 * inter + smooth) / (sum_p + sum_t + smooth)
    bce_loss = sum_bce / n_elems   # BCEWithLogitsLoss default reduction: mean
    return dice_loss + bce_loss


def _dice_bce_ref(pred, target, smooth=1e-6):
    """Pure-JAX reference mirroring the PyTorch module semantics."""
    p = jax.nn.sigmoid(pred.astype(jnp.float32))
    t = target.astype(jnp.float32)
    inter = jnp.sum(p * t)
    dice = 1.0 - (2.0 * inter + smooth) / (jnp.sum(p) + jnp.sum(t) + smooth)
    z = p  # module feeds sigmoid(pred) into BCEWithLogitsLoss (intentional)
    bce = jnp.mean(jnp.maximum(z, 0.0) - z * t + jnp.log1p(jnp.exp(-jnp.abs(z))))
    return dice + bce


if __name__ == "__main__":
    key = jax.random.PRNGKey(0)
    k1, k2 = jax.random.split(key)
    # NCHW logits and binary targets, small shapes.
    pred = jax.random.normal(k1, (2, 4, 16, 16), dtype=jnp.float32)
    target = (jax.random.uniform(k2, (2, 4, 16, 16)) > 0.5).astype(jnp.float32)

    loss = jax.block_until_ready(dice_bce_loss(pred, target))
    ref = jax.block_until_ready(_dice_bce_ref(pred, target))
    assert jnp.allclose(loss, ref, atol=1e-5, rtol=1e-5), (loss, ref)
    print("KERNEL_OK")
</pallas_src>

<mosaic_0001>
module attributes {stable_mosaic.version = 11 : i64} {
  func.func @_dice_bce_partials_kernel(%arg0: i32, %arg1: i32, %arg2: memref<8x128xf32, #tpu.memory_space<vmem>>, %arg3: memref<8x128xf32, #tpu.memory_space<vmem>>, %arg4: memref<32x128xf32, #tpu.memory_space<vmem>>) attributes {dimension_semantics = [#tpu.dimension_semantics<parallel>, #tpu.dimension_semantics<arbitrary>], iteration_bounds = array<i64: 2, 1>, scalar_prefetch = 0 : i64, scratch_operands = 0 : i64, tpu.core_type = #tpu.core_type<tc>, window_params = [{transform_indices = @transform_0, window_bounds = array<i64: 8, 128>}, {transform_indices = @transform_1, window_bounds = array<i64: 8, 128>}, {transform_indices = @transform_2, window_bounds = array<i64: 32, 128>}]} {
    %c0_i32 = arith.constant 0 : i32
    %0 = arith.cmpi eq, %arg1, %c0_i32 : i32
    %1 = arith.extui %0 : i1 to i32
    %c0_i32_0 = arith.constant 0 : i32
    %2 = arith.cmpi ne, %1, %c0_i32_0 : i32
    scf.if %2 {
      %cst_22 = arith.constant 0.000000e+00 : f32
      %37 = vector.broadcast %cst_22 : f32 to vector<32x128xf32>
      %c0_23 = arith.constant 0 : index
      %c0_24 = arith.constant 0 : index
      %38 = vector.load %arg4[%c0_23, %c0_24] : memref<32x128xf32, #tpu.memory_space<vmem>>, vector<32x128xf32>
      tpu.vector_store %arg4[%c0_23, %c0_24], %37 {strides = array<i32>} : memref<32x128xf32, #tpu.memory_space<vmem>>, vector<32x128xf32>,
    } else {
    }
    %c0 = arith.constant 0 : index
    %c0_1 = arith.constant 0 : index
    %3 = vector.load %arg2[%c0, %c0_1] : memref<8x128xf32, #tpu.memory_space<vmem>>, vector<8x128xf32>
    %c0_2 = arith.constant 0 : index
    %c0_3 = arith.constant 0 : index
    %4 = vector.load %arg3[%c0_2, %c0_3] : memref<8x128xf32, #tpu.memory_space<vmem>>, vector<8x128xf32>
    %5 = arith.negf %3 : vector<8x128xf32>
    %6 = math.exp %5 : vector<8x128xf32>
    %cst = arith.constant 1.000000e+00 : f32
    %7 = vector.broadcast %cst : f32 to vector<8x128xf32>
    %8 = arith.addf %7, %6 : vector<8x128xf32>
    %9 = arith.divf %7, %8 : vector<8x128xf32>
    %cst_4 = arith.constant 0.000000e+00 : f32
    %10 = vector.broadcast %cst_4 : f32 to vector<8x128xf32>
    %11 = arith.subf %10, %9 : vector<8x128xf32>
    %12 = math.exp %11 : vector<8x128xf32>
    %13 = math.log1p %12 : vector<8x128xf32>
    %14 = arith.mulf %9, %4 : vector<8x128xf32>
    %15 = arith.subf %9, %14 : vector<8x128xf32>
    %16 = arith.addf %15, %13 : vector<8x128xf32>
    %c0_5 = arith.constant 0 : index
    %c0_6 = arith.constant 0 : index
    %17 = vector.load %arg4[%c0_5, %c0_6] : memref<32x128xf32, #tpu.memory_space<vmem>>, vector<8x128xf32>
    %18 = vector.shape_cast %14 : vector<8x128xf32> to vector<1x8x128xf32>
    %cst_7 = arith.constant dense<0.000000e+00> : vector<8x128xf32>
    %19 = vector.multi_reduction <add>, %18, %cst_7 [0] : vector<1x8x128xf32> to vector<8x128xf32>
    %20 = arith.addf %17, %19 : vector<8x128xf32>
    %c0_8 = arith.constant 0 : index
    %c0_9 = arith.constant 0 : index
    %21 = vector.load %arg4[%c0_8, %c0_9] : memref<32x128xf32, #tpu.memory_space<vmem>>, vector<8x128xf32>
    tpu.vector_store %arg4[%c0_8, %c0_9], %20 {strides = array<i32>} : memref<32x128xf32, #tpu.memory_space<vmem>>, vector<8x128xf32>,
    %c8 = arith.constant 8 : index
    %c0_10 = arith.constant 0 : index
    %22 = vector.load %arg4[%c8, %c0_10] : memref<32x128xf32, #tpu.memory_space<vmem>>, vector<8x128xf32>
    %23 = vector.shape_cast %9 : vector<8x128xf32> to vector<1x8x128xf32>
    %cst_11 = arith.constant dense<0.000000e+00> : vector<8x128xf32>
    %24 = vector.multi_reduction <add>, %23, %cst_11 [0] : vector<1x8x128xf32> to vector<8x128xf32>
    %25 = arith.addf %22, %24 : vector<8x128xf32>
    %c8_12 = arith.constant 8 : index
    %c0_13 = arith.constant 0 : index
    %26 = vector.load %arg4[%c8_12, %c0_13] : memref<32x128xf32, #tpu.memory_space<vmem>>, vector<8x128xf32>
    tpu.vector_store %arg4[%c8_12, %c0_13], %25 {strides = array<i32>} : memref<32x128xf32, #tpu.memory_space<vmem>>, vector<8x128xf32>,
    %c16 = arith.constant 16 : index
    %c0_14 = arith.constant 0 : index
    %27 = vector.load %arg4[%c16, %c0_14] : memref<32x128xf32, #tpu.memory_space<vmem>>, vector<8x128xf32>
    %28 = vector.shape_cast %4 : vector<8x128xf32> to vector<1x8x128xf32>
    %cst_15 = arith.constant dense<0.000000e+00> : vector<8x128xf32>
    %29 = vector.multi_reduction <add>, %28, %cst_15 [0] : vector<1x8x128xf32> to vector<8x128xf32>
    %30 = arith.addf %27, %29 : vector<8x128xf32>
    %c16_16 = arith.constant 16 : index
    %c0_17 = arith.constant 0 : index
    %31 = vector.load %arg4[%c16_16, %c0_17] : memref<32x128xf32, #tpu.memory_space<vmem>>, vector<8x128xf32>
    tpu.vector_store %arg4[%c16_16, %c0_17], %30 {strides = array<i32>} : memref<32x128xf32, #tpu.memory_space<vmem>>, vector<8x128xf32>,
    %c24 = arith.constant 24 : index
    %c0_18 = arith.constant 0 : index
    %32 = vector.load %arg4[%c24, %c0_18] : memref<32x128xf32, #tpu.memory_space<vmem>>, vector<8x128xf32>
    %33 = vector.shape_cast %16 : vector<8x128xf32> to vector<1x8x128xf32>
    %cst_19 = arith.constant dense<0.000000e+00> : vector<8x128xf32>
    %34 = vector.multi_reduction <add>, %33, %cst_19 [0] : vector<1x8x128xf32> to vector<8x128xf32>
    %35 = arith.addf %32, %34 : vector<8x128xf32>
    %c24_20 = arith.constant 24 : index
    %c0_21 = arith.constant 0 : index
    %36 = vector.load %arg4[%c24_20, %c0_21] : memref<32x128xf32, #tpu.memory_space<vmem>>, vector<8x128xf32>
    tpu.vector_store %arg4[%c24_20, %c0_21], %35 {strides = array<i32>} : memref<32x128xf32, #tpu.memory_space<vmem>>, vector<8x128xf32>,
    return
  }
  func.func @transform_0(%arg0: i32, %arg1: i32) -> (i32, i32) {
    %c1_i32 = arith.constant 1 : i32
    %0 = arith.muli %arg0, %c1_i32 : i32
    %1 = arith.addi %0, %arg1 : i32
    %c0_i32 = arith.constant 0 : i32
    %c0_i32_0 = arith.constant 0 : i32
    return %1, %c0_i32 : i32, i32
  }
  func.func @transform_1(%arg0: i32, %arg1: i32) -> (i32, i32) {
    %c1_i32 = arith.constant 1 : i32
    %0 = arith.muli %arg0, %c1_i32 : i32
    %1 = arith.addi %0, %arg1 : i32
    %c0_i32 = arith.constant 0 : i32
    %c0_i32_0 = arith.constant 0 : i32
    return %1, %c0_i32 : i32, i32
  }
  func.func @transform_2(%arg0: i32, %arg1: i32) -> (i32, i32) {
    %c0_i32 = arith.constant 0 : i32
    %c0_i32_0 = arith.constant 0 : i32
    return %arg0, %c0_i32 : i32, i32
  }
}

</mosaic_0001>

<bundles_post_ra>
// kernel: tpu_custom_call.1
= control target key start
LH: loop header
LB: loop body
LE: loop exit
PB: predicated region body
PF: predicated region fallthrough
CT: control target
= control target key end

     0   :  { %7 = vsyncpa [#allocation3], 0  ;;  %s872_s0 = inlined_call_operand.hbm [shape: f32[16,128], index: 0, kind: input, shape index: {}]   ;;  %s873_s1 = inlined_call_operand.hbm [shape: f32[16,128], index: 1, kind: input, shape index: {}]   ;;  %s874_s2 = inlined_call_operand.hbm [shape: f32[64,128], index: 2, kind: output, shape index: {}]  }
   0x1   :  { %9 = vsyncpa [#allocation3 + $0x1], 0 }
   0x2   :  { %10 = vsyncpa [#allocation6], 0 }
   0x3   :  { %12 = vsyncpa [#allocation6 + $0x1], 0 }
   0x4   :  { %13 = vsyncpa [#allocation4], 0 }
   0x5   :  { %15 = vsyncpa [#allocation4 + $0x1], 0  ;;  %s649_s9 = smov 0   ;;  %s651_s10 = smov 0  }
   0x6   :  { %s653_s11 = smov 0   ;;  %s655_s12 = smov 0  }
   0x7   :  { %s657_s13 = smov 0   ;;  %s659_s14 = smov 0  }
   0x8 LB: > { %s384_s15 = sadd.s32 4294967295, %s627_s14   ;;  %s385_s16 = sadd.s32 4294967294, %s627_s14   ;;  %s627_s14 = sphi %s659_s14, %s21_s14   ;;  %s623_s13 = sphi %s657_s13, %s894_s13   ;;  %s619_s12 = sphi %s655_s12, %s893_s12   ;;  %s615_s11 = sphi %s653_s11, %s892_s11   ;;  %s611_s10 = sphi %s651_s10, %s891_s10   ;;  %s607_s9 = sphi %s649_s9, %s890_s9  }
   0x9   : > { %s33_s17 = sadd.s32 1, %s623_s13  ;;  %s42_s18 = sadd.s32 1, %s615_s11 }
   0xa   : > { %p35_p0 = scmp.ge.s32.totalorder %s33_s17, 2  ;;  %p49_p1 = scmp.ne.s32.totalorder %s615_s11, %s611_s10 }
   0xb   : > { %p50_p2 = scmp.eq.s32.totalorder %s627_s14, 0  ;;  %p55_p3 = scmp.ne.s32.totalorder %s611_s10, %s607_s9 }
   0xc   : > { %s896_s17 = smov (%p35_p0, %s33_s17), 0  ;;  %p56_p5 = scmp.eq.s32.totalorder %s384_s15, 0 }
   0xd   : > { %p690_p4 = por %p50_p2, %p49_p1  ;;  %s39_s20 = ssub.s32 %s623_s13, %s896_s17 }
   0xe   : > { %p107_p6 = scmp.eq.s32.totalorder %s384_s15, 1  ;;  %p40_p7 = scmp.eq.s32.totalorder %s39_s20, 0 }
   0xf   : > { %p696_p8 = por %p56_p5, %p55_p3  ;;  %p113_p10 = scmp.eq.s32.totalorder %s385_s16, 1 }
  0x10   : > { %p700_p9 = por %p107_p6, %p49_p1  ;;  %p420_p13 = scmp.lt.s32.totalorder %s627_s14, 2 }
  0x11   : > { %s878_s21 = scalar_select %p696_p8, 1, 0 }
  0x12   : > { %s879_s22 = scalar_select %p700_p9, 1, 0 }
  0x13   : > { %s705_s23 = scalar_select %p40_p7, %s615_s11, %s42_s18  }
  0x14   : > { %p707_p11 = por %p113_p10, %p55_p3  ;;  %s714_s25 = sand.u32 1, %s615_s11  }
  0x15   : > { %s388_s26 = sshll.u32 %s714_s25, 3  ;;  %s389_s27 = sshll.u32 %s623_s13, 7 }
  0x16   : > { %s880_s24 = scalar_select %p707_p11, 1, 0 }
  0x17   : > { %s723_s30 = scalar_lea.hbm %s872_s0, %s389_s27  ;;  %s137_s3 = scalar_lea.vmem [#allocation2], %s388_s26 }
  0x18   : > { %s145_s4 = sshll.u32 %s137_s3, 4  ;;  %p731_p0 = pnand %p420_p13, %p690_p4  ;;  %s727_s4 = int_to_ptr.vmem [resolvable:$true] %s145_s4 }
  0x19   : > { %s134_s6 = scalar_lea.sflag [#allocation3], %s714_s25  ;;  %s481_s7 = scalar_lea.hbm %s723_s30, 128 }
  0x1a   : > { %p482_p3 = scmp.ne.s32.totalorder %s723_s30, %s481_s7  ;;  %p483_p5 = pneg %p731_p0 }
  0x1b   : > { %s486_s16 = scalar_lea.hbm %s872_s0, 256  ;;  %p487_p4 = scmp.lt.u32.totalorder %s723_s30, %s872_s0 }
  0x1c   : > { %p484_p6 = pnand %p483_p5, %p482_p3  ;;  %p488_p10 = scmp.lt.u32.totalorder %s486_s16, %s481_s7 }
  0x1d   : > { %p490_p12 = scmp.lt.u32.totalorder %s481_s7, %s723_s30 }
  0x1e   : > { %p485_p7 = pneg %p484_p6  ;;  %p489_p13 = por %p488_p10, %p487_p4 }
  0x20   : > { %p491_p1 = por %p490_p12, %p489_p13 }
  0x22   : > { %p492_p2 = pnand %p491_p1, %p485_p7 }
  0x24   : > { %495 = shalt.err (!%p492_p2)
}
  0x25   : > { %s496_s20 = scalar_lea.vmem %s727_s4, 128  ;;  %s629_s28 = smov [#allocation2]  }
  0x26   : > { %p497_p3 = scmp.ne.s32.totalorder %s727_s4, %s496_s20  ;;  %s501_s29 = sshll.u32 %s629_s28, 4  ;;  %s502_s29 = int_to_ptr.vmem [resolvable:$false] %s501_s29 }
  0x27   : > { %s503_s3 = scalar_lea.vmem %s502_s29, 256  ;;  %p504_p9 = scmp.lt.s32.totalorder %s727_s4, %s502_s29 }
  0x28   : > { %p499_p6 = pnand %p497_p3, %p483_p5  ;;  %p505_p4 = scmp.lt.s32.totalorder %s503_s3, %s496_s20 }
  0x2a   : > { %p500_p11 = pneg %p499_p6  ;;  %p506_p10 = por %p505_p4, %p504_p9 }
  0x2c   : > { %p507_p12 = pnand %p506_p10, %p500_p11 }
  0x2e   : > { %510 = shalt.err (!%p507_p12)
}
  0x2f   : > { %412 = dma.hbm_to_vmem [thread:$0]  (!%p731_p0), %s723_s30, 128, %s727_s4, %s134_s6  }
  0x30   : > { %p882_p1 = scmp.lt.s32.totalorder %s627_s14, 3  ;;  %p883_p2 = scmp.ge.s32.totalorder %s627_s14, 1 }
  0x31   : > { %s776_s16 = scalar_lea.hbm %s873_s1, %s389_s27  ;;  %s156_s18 = scalar_lea.vmem [#allocation5], %s388_s26 }
  0x32   : > { %p767_p7 = pnand %p883_p2, %p882_p1  ;;  %s164_s19 = sshll.u32 %s156_s18, 4  ;;  %s165_s19 = int_to_ptr.vmem [resolvable:$true] %s164_s19 }
  0x33   : > { %s153_s30 = scalar_lea.sflag [#allocation6], %s714_s25  ;;  %s511_s4 = scalar_lea.hbm %s776_s16, 128 }
  0x34   : > { %s884_s7 = scalar_select %p767_p7, 1, 0 }
  0x35   : > { %p512_p9 = scmp.ne.s32.totalorder %s776_s16, %s511_s4  ;;  %s516_s27 = scalar_lea.hbm %s873_s1, 256 }
  0x36   : > { %p517_p3 = scmp.lt.u32.totalorder %s776_s16, %s873_s1  ;;  %p518_p6 = scmp.lt.u32.totalorder %s516_s27, %s511_s4 }
  0x37   : > { %p514_p11 = pnand %p512_p9, %p483_p5  ;;  %p520_p10 = scmp.lt.u32.totalorder %s511_s4, %s776_s16 }
  0x38   : > { %p519_p4 = por %p518_p6, %p517_p3 }
  0x39   : > { %p515_p13 = pneg %p514_p11 }
  0x3a   : > { %p521_p12 = por %p520_p10, %p519_p4 }
  0x3c   : > { %p522_p1 = pnand %p521_p12, %p515_p13 }
  0x3e   : > { %525 = shalt.err (!%p522_p1)
}
  0x3f   : > { %s526_s25 = scalar_lea.vmem %s165_s19, 128  ;;  %s630_s26 = smov [#allocation5]  }
  0x40   : > { %p527_p2 = scmp.ne.s32.totalorder %s165_s19, %s526_s25  ;;  %s531_s3 = sshll.u32 %s630_s26, 4  ;;  %s532_s3 = int_to_ptr.vmem [resolvable:$false] %s531_s3 }
  0x41   : > { %s533_s8 = scalar_lea.vmem %s532_s3, 256  ;;  %p534_p8 = scmp.lt.s32.totalorder %s165_s19, %s532_s3 }
  0x42   : > { %p529_p9 = pnand %p527_p2, %p483_p5  ;;  %p535_p7 = scmp.lt.s32.totalorder %s533_s8, %s526_s25 }
  0x44   : > { %p530_p11 = pneg %p529_p9  ;;  %p536_p3 = por %p535_p7, %p534_p8 }
  0x46   : > { %p537_p6 = pnand %p536_p3, %p530_p11 }
  0x48   : > { %540 = shalt.err (!%p537_p6)
}
  0x49   : > { %415 = dma.hbm_to_vmem [thread:$0]  (!%p731_p0), %s776_s16, 128, %s165_s19, %s153_s30  }
  0x4a   : > { %p885_p13 = scmp.ne.s32.totalorder %s884_s7, 0 }
  0x4b   : > { %s803_s15 = sand.u32 (!%p885_p13), 1, %s611_s10   ;;  %p886_p5 = scmp.ne.s32.totalorder (!%p885_p13), %s878_s21, 0 }
  0x4c   : > { %173 = sbr.rel (%p885_p13) target bundleno = 161 (0xa1), region = 28  ;;  %s393_s18 = sshll.u32 (!%p885_p13), %s803_s15, 3 }
  0x4d   : > { %s176_s4 = scalar_lea.sflag (!%p885_p13), [#allocation3], %s803_s15  ;;  %s179_s6 = scalar_lea.vmem (!%p885_p13), [#allocation2], %s393_s18 }
  0x53   : > { %594 = dma.done.wait (%p886_p5), %s176_s4, 128  }
  0x54   : > { %596 = vsyncadd (%p886_p5), %s176_s4, 4294967168  ;;  %s185_s5 = scalar_lea.sflag [#allocation6], %s803_s15  ;;  %s188_s16 = scalar_lea.vmem [#allocation5], %s393_s18 }
  0x55   : > { %598 = dma.done.wait (%p886_p5), %s185_s5, 128  }
  0x56   : > { %600 = vsyncadd (%p886_p5), %s185_s5, 4294967168  ;;  %s395_s7 = sshll.u32 %s803_s15, 5  ;;  %v225_v0 = vld [vmem:[%s179_s6] sm:$0xff]  ;;  %v226_v1 = vld [vmem:[%s188_s16] sm:$0xff]  ;;  %s402_s21 = sshll.u32 %s619_s12, 9 }
  0x57   : > { %v396_v2 = vmul.f32 -1.442695, %v225_v0  ;;  %s213_s19 = scalar_lea.vmem [#allocation7], %s395_s7  ;;  %s821_s28 = scalar_lea.hbm %s874_s2, %s402_s21 }
  0x58   : > { %259 = vst [vmem:[%s213_s19 + $0x10] sm:$0xff] %v226_v1  ;;  %s278_s30 = sshll.u32 %s213_s19, 4  ;;  %s265_s29 = scalar_lea.sflag [#allocation4], %s803_s15  ;;  %s823_s30 = int_to_ptr.vmem [resolvable:$true] %s278_s30 }
  0x59   : > { %473 = vpow2.f32 %v396_v2  ;;  %s541_s25 = scalar_lea.vmem %s823_s30, 512  ;;  %p887_p0 = scmp.ne.s32.totalorder %s879_s22, 0 }
  0x5a   : > { %p542_p8 = scmp.ne.s32.totalorder %s823_s30, %s541_s25  ;;  %s631_s12 = smov [#allocation7]  }
  0x5b   : > { %s545_s26 = sshll.u32 %s631_s12, 4  ;;  %s546_s26 = int_to_ptr.vmem [resolvable:$false] %s545_s26 }
  0x5c   : > { %p543_p7 = pnand %p542_p8, %p887_p0  ;;  %s547_s3 = scalar_lea.vmem %s546_s26, 1024 }
  0x5d   : > { %p548_p10 = scmp.lt.s32.totalorder %s823_s30, %s546_s26  ;;  %p549_p12 = scmp.lt.s32.totalorder %s547_s3, %s541_s25 }
  0x5e   : > { %p544_p4 = pneg %p543_p7 }
  0x5f   : > { %p550_p1 = por %p549_p12, %p548_p10 }
  0x61   : > { %p551_p2 = pnand %p550_p1, %p544_p4 }
  0x63   : > { %v474_v3 = vpop.eup %473 }
  0x64   : > { %v230_v4 = vadd.f32 1.0, %v474_v3 }
  0x66   : > { %475 = vrcp.f32 %v230_v4 }
  0x70   : > { %v476_v5 = vpop.eup %475 }
  0x71   : > { %v245_v6 = vmul.f32 %v476_v5, %v226_v1  ;;  %v233_v7 = vsub.f32 0.0, %v476_v5  ;;  %255 = vst [vmem:[%s213_s19 + $0x8] sm:$0xff] %v476_v5 }
  0x73   : > { %v234_v8 = vmul.f32 1.442695, %v233_v7  ;;  %251 = vst [vmem:[%s213_s19] sm:$0xff] %v245_v6  ;;  %v246_v16 = vsub.f32 %v476_v5, %v245_v6 }
  0x75   : > { %477 = vpow2.f32 %v234_v8 }
  0x7f   : > { %v478_v9 = vpop.eup %477 }
  0x80   : > { %v236_v10 = vadd.f32 1.0, %v478_v9  ;;  %v239_v11 = vmul.f32 -0.5, %v478_v9  ;;  %v242_v13 = vand.u32 2147483647, %v478_v9 }
  0x82   : > { %479 = vlog2.f32 %v236_v10  ;;  %v240_v12 = vadd.f32 1.0, %v239_v11  ;;  %vm243_vm0 = vcmp.lt.f32.partialorder %v242_v13, 0.0004427343 }
  0x84   : > { %v241_v14 = vmul.f32 %v478_v9, %v240_v12 }
  0x8c   : > { %v480_v15 = vpop.eup %479 }
  0x8d   : > { %v238_v17 = vmul.f32 0.6931472, %v480_v15 }
  0x8f   : > { %v244_v18 = vsel %vm243_vm0, %v241_v14, %v238_v17 }
  0x90   : > { %v247_v19 = vadd.f32 %v246_v16, %v244_v18 }
  0x92   : > { %263 = vst [vmem:[%s213_s19 + $0x18] sm:$0xff] %v247_v19 }
  0x93   : > { %554 = shalt.err (!%p551_p2)
}
  0x94   : > { %s555_s8 = scalar_lea.hbm %s821_s28, 512  ;;  %s559_s6 = scalar_lea.hbm %s874_s2, 1024 }
  0x95   : > { %p556_p9 = scmp.ne.s32.totalorder %s821_s28, %s555_s8  ;;  %p560_p6 = scmp.lt.u32.totalorder %s821_s28, %s874_s2 }
  0x96   : > { %p561_p13 = scmp.lt.u32.totalorder %s559_s6, %s555_s8  ;;  %p563_p8 = scmp.lt.u32.totalorder %s555_s8, %s821_s28 }
  0x97   : > { %p557_p11 = pnand %p556_p9, %p887_p0 }
  0x98   : > { %p562_p5 = por %p561_p13, %p560_p6 }
  0x99   : > { %p558_p3 = pneg %p557_p11 }
  0x9a   : > { %p564_p7 = por %p563_p8, %p562_p5 }
  0x9c   : > { %p565_p4 = pnand %p564_p7, %p558_p3 }
  0x9e   : > { %568 = shalt.err (!%p565_p4)
}
  0x9f   : > { %s632_s7 = smov 128   ;;  %s633_s19 = smov 8  }
  0xa0   : > { %407 = dma.vmem_to_hbm [thread:$0]  (%p887_p0), %s823_s30, 512, %s821_s28, %s265_s29, %s632_s7, %s632_s7, %s633_s19  }
  0xa1 PF: > { %s293_s21 = sand.u32 1, %s607_s9   ;;  %p888_p10 = scmp.ne.s32.totalorder %s880_s24, 0 }
  0xa2   : > { %p889_p12 = scmp.ge.s32.totalorder %s627_s14, 2  ;;  %s294_s20 = scalar_lea.sflag [#allocation4], %s293_s21 }
  0xa4   : > { %p417_p1 = pnand %p889_p12, %p888_p10 }
  0xa6   : > { %602 = dma.done.wait (!%p417_p1), %s294_s20, 512  }
  0xa7   : > { %604 = vsyncadd (!%p417_p1), %s294_s20, 4294966784  ;;  %s21_s14 = sadd.s32 1, %s627_s14   ;;  %s890_s9 = smov %s611_s10 }
  0xa8   : > { %p18_p2 = scmp.ge.s32.totalorder %s21_s14, 4   ;;  %s891_s10 = smov %s615_s11 }
  0xa9   : > { %s892_s11 = smov %s705_s23  ;;  %s893_s12 = smov %s623_s13 }
  0xaa   : > { %s894_s13 = smov %s896_s17  ;;  %20 = sbr.rel (!%p18_p2) target bundleno = 8 (0x8), region = 90 }
  0xb1   :  { %299 = vsyncpa [#allocation3], 1 }
  0xb2   :  { %301 = vsyncpa [#allocation3 + $0x1], 1 }
  0xb3   :  { %302 = vsyncpa [#allocation6], 1 }
  0xb4   :  { %304 = vsyncpa [#allocation6 + $0x1], 1 }
  0xb5   :  { %305 = vsyncpa [#allocation4], 1 }
  0xb6   :  { %307 = vsyncpa [#allocation4 + $0x1], 1 }

</bundles_post_ra>
